<compile_context>
chip_gen: v6e
topology: v6e:2x2x1
jax: 0.10.0
libtpu: 0.0.40
codegen_flags: <defaults>
</compile_context>

<pallas_src>
import jax
import jax.numpy as jnp
import numpy as np
from jax.experimental import pallas as pl
from jax.experimental.pallas import tpu as pltpu

EPS = 1e-5
LANE = 128
MAX_TILE_M = 1024
VMEM_LIMIT = 48 * 1024 * 1024          # explicit scoped-VMEM limit (all chips OK)
VMEM_BUDGET = 40 * 1024 * 1024         # planning budget for tile_m selection


def _round_up(x, m):
    return (x + m - 1) // m * m


def _pad2d(a, rows, cols):
    return jnp.pad(a, ((0, rows - a.shape[0]), (0, cols - a.shape[1])))


def _compiler_params():
    return pltpu.CompilerParams(dimension_semantics=("parallel",),
                                vmem_limit_bytes=VMEM_LIMIT)


def _pick_tile_m(m, stream_bytes_per_row, resident_bytes):
    """Largest power-of-two tile (<= MAX_TILE_M, multiple of LANE) fitting VMEM."""
    tile = MAX_TILE_M
    while tile > LANE and resident_bytes + 2 * tile * stream_bytes_per_row > VMEM_BUDGET:
        tile //= 2
    tile = max(LANE, tile)
    return min(tile, _round_up(m, LANE))


# ---------------------------------------------------------------------------
# Pallas kernels
# ---------------------------------------------------------------------------
def _conv_stats_kernel(x_ref, w_ref, y_ref, s_ref):
    """bf16 matmul (f32 acc) + per-tile partial sum / sum-of-squares."""
    acc = jnp.dot(x_ref[...], w_ref[...], preferred_element_type=jnp.float32)
    y_ref[...] = acc
    s = jnp.sum(acc, axis=0, keepdims=True)
    sq = jnp.sum(acc * acc, axis=0, keepdims=True)
    s_ref[...] = jnp.concatenate([s, sq], axis=0)[None]


def _conv_stats_dual_kernel(x_ref, w_ref, xr_ref, wr_ref,
                            y_ref, s_ref, yr_ref, sr_ref):
    """conv1 (3x3 im2col) matmul + fused downsample 1x1 matmul, both w/ stats."""
    acc = jnp.dot(x_ref[...], w_ref[...], preferred_element_type=jnp.float32)
    y_ref[...] = acc
    s = jnp.sum(acc, axis=0, keepdims=True)
    sq = jnp.sum(acc * acc, axis=0, keepdims=True)
    s_ref[...] = jnp.concatenate([s, sq], axis=0)[None]

    accr = jnp.dot(xr_ref[...], wr_ref[...], preferred_element_type=jnp.float32)
    yr_ref[...] = accr
    sr = jnp.sum(accr, axis=0, keepdims=True)
    sqr = jnp.sum(accr * accr, axis=0, keepdims=True)
    sr_ref[...] = jnp.concatenate([sr, sqr], axis=0)[None]


def _bn_relu_kernel(y_ref, a_ref, o_ref):
    """y * scale + shift, ReLU.  a_ref rows: [scale; shift]."""
    y = y_ref[...] * a_ref[0:1, :] + a_ref[1:2, :]
    o_ref[...] = jnp.maximum(y, 0.0).astype(o_ref.dtype)


def _bn_relu_add_bn_relu_kernel(y_ref, a_ref, r_ref, ar_ref, o_ref):
    """relu(bn2(conv2)) + bn_d(conv_d), final ReLU (downsample path)."""
    y = jnp.maximum(y_ref[...] * a_ref[0:1, :] + a_ref[1:2, :], 0.0)
    r = r_ref[...] * ar_ref[0:1, :] + ar_ref[1:2, :]
    o_ref[...] = jnp.maximum(y + r, 0.0).astype(o_ref.dtype)


def _bn_relu_add_relu_kernel(y_ref, a_ref, r_ref, o_ref):
    """relu(bn2(conv2)) + identity residual, final ReLU."""
    y = jnp.maximum(y_ref[...] * a_ref[0:1, :] + a_ref[1:2, :], 0.0)
    o_ref[...] = jnp.maximum(y + r_ref[...], 0.0).astype(o_ref.dtype)


# ---------------------------------------------------------------------------
# pallas_call wrappers (tiled over M, fully "parallel" grid)
# ---------------------------------------------------------------------------
def conv_stats(patches, w, tile_m):
    m_p, k_p = patches.shape
    c_p = w.shape[1]
    nt = m_p // tile_m
    return pl.pallas_call(
        _conv_stats_kernel,
        grid=(nt,),
        in_specs=[
            pl.BlockSpec((tile_m, k_p), lambda i: (i, 0)),
            pl.BlockSpec((k_p, c_p), lambda i: (0, 0)),
        ],
        out_specs=[
            pl.BlockSpec((tile_m, c_p), lambda i: (i, 0)),
            pl.BlockSpec((1, 2, c_p), lambda i: (i, 0, 0)),
        ],
        out_shape=[
            jax.ShapeDtypeStruct((m_p, c_p), jnp.float32),
            jax.ShapeDtypeStruct((nt, 2, c_p), jnp.float32),
        ],
        compiler_params=_compiler_params(),
        cost_estimate=pl.CostEstimate(
            flops=2 * m_p * k_p * c_p,
            transcendentals=0,
            bytes_accessed=patches.size * 2 + w.size * 2
            + m_p * c_p * 4 + nt * 2 * c_p * 4),
    )(patches, w)


def conv_stats_dual(patches, w, xr, wr, tile_m):
    m_p, k_p = patches.shape
    c_p = w.shape[1]
    kr_p = xr.shape[1]
    nt = m_p // tile_m
    return pl.pallas_call(
        _conv_stats_dual_kernel,
        grid=(nt,),
        in_specs=[
            pl.BlockSpec((tile_m, k_p), lambda i: (i, 0)),
            pl.BlockSpec((k_p, c_p), lambda i: (0, 0)),
            pl.BlockSpec((tile_m, kr_p), lambda i: (i, 0)),
            pl.BlockSpec((kr_p, c_p), lambda i: (0, 0)),
        ],
        out_specs=[
            pl.BlockSpec((tile_m, c_p), lambda i: (i, 0)),
            pl.BlockSpec((1, 2, c_p), lambda i: (i, 0, 0)),
            pl.BlockSpec((tile_m, c_p), lambda i: (i, 0)),
            pl.BlockSpec((1, 2, c_p), lambda i: (i, 0, 0)),
        ],
        out_shape=[
            jax.ShapeDtypeStruct((m_p, c_p), jnp.float32),
            jax.ShapeDtypeStruct((nt, 2, c_p), jnp.float32),
            jax.ShapeDtypeStruct((m_p, c_p), jnp.float32),
            jax.ShapeDtypeStruct((nt, 2, c_p), jnp.float32),
        ],
        compiler_params=_compiler_params(),
        cost_estimate=pl.CostEstimate(
            flops=2 * m_p * (k_p + kr_p) * c_p,
            transcendentals=0,
            bytes_accessed=(patches.size + w.size + xr.size + wr.size) * 2
            + 2 * m_p * c_p * 4 + 2 * nt * 2 * c_p * 4),
    )(patches, w, xr, wr)


def bn_relu(y_raw, affine, tile_m, out_dtype):
    m_p, c_p = y_raw.shape
    nt = m_p // tile_m
    return pl.pallas_call(
        _bn_relu_kernel,
        grid=(nt,),
        in_specs=[
            pl.BlockSpec((tile_m, c_p), lambda i: (i, 0)),
            pl.BlockSpec((2, c_p), lambda i: (0, 0)),
        ],
        out_specs=pl.BlockSpec((tile_m, c_p), lambda i: (i, 0)),
        out_shape=jax.ShapeDtypeStruct((m_p, c_p), out_dtype),
        compiler_params=_compiler_params(),
    )(y_raw, affine)


def bn_relu_add_bn_relu(y_raw, a, r_raw, ar, tile_m):
    m_p, c_p = y_raw.shape
    nt = m_p // tile_m
    return pl.pallas_call(
        _bn_relu_add_bn_relu_kernel,
        grid=(nt,),
        in_specs=[
            pl.BlockSpec((tile_m, c_p), lambda i: (i, 0)),
            pl.BlockSpec((2, c_p), lambda i: (0, 0)),
            pl.BlockSpec((tile_m, c_p), lambda i: (i, 0)),
            pl.BlockSpec((2, c_p), lambda i: (0, 0)),
        ],
        out_specs=pl.BlockSpec((tile_m, c_p), lambda i: (i, 0)),
        out_shape=jax.ShapeDtypeStruct((m_p, c_p), jnp.float32),
        compiler_params=_compiler_params(),
    )(y_raw, a, r_raw, ar)


def bn_relu_add_relu(y_raw, a, res, tile_m):
    m_p, c_p = y_raw.shape
    nt = m_p // tile_m
    return pl.pallas_call(
        _bn_relu_add_relu_kernel,
        grid=(nt,),
        in_specs=[
            pl.BlockSpec((tile_m, c_p), lambda i: (i, 0)),
            pl.BlockSpec((2, c_p), lambda i: (0, 0)),
            pl.BlockSpec((tile_m, c_p), lambda i: (i, 0)),
        ],
        out_specs=pl.BlockSpec((tile_m, c_p), lambda i: (i, 0)),
        out_shape=jax.ShapeDtypeStruct((m_p, c_p), jnp.float32),
        compiler_params=_compiler_params(),
    )(y_raw, a, res)


# ---------------------------------------------------------------------------
# Glue: im2col, BN affine prep, parameters, BasicBlock wrapper
# ---------------------------------------------------------------------------
def im2col_3x3(x_nhwc, stride):
    """3x3, pad=1 patches. Returns ((N*Ho*Wo, 9*C) same dtype, (N, Ho, Wo))."""
    n, h, w, c = x_nhwc.shape
    xp = jnp.pad(x_nhwc, ((0, 0), (1, 1), (1, 1), (0, 0)))
    ho = (h + 2 - 3) // stride + 1
    wo = (w + 2 - 3) // stride + 1
    cols = []
    for dy in range(3):
        for dx in range(3):
            cols.append(xp[:, dy:dy + stride * (ho - 1) + 1:stride,
                           dx:dx + stride * (wo - 1) + 1:stride, :])
    patches = jnp.concatenate(cols, axis=-1)            # (N, Ho, Wo, 9*C)
    return patches.reshape(n * ho * wo, 9 * c), (n, ho, wo)


def _bn_affine(partials, g_pad, b_pad, m_true):
    """Reduce per-tile (sum, sumsq) partials -> (2, C_p) [scale; shift]."""
    tot = jnp.sum(partials, axis=0)                      # (2, C_p)
    mean = tot[0] / m_true
    var = jnp.maximum(tot[1] / m_true - mean * mean, 0.0)   # biased, torch train BN
    scale = g_pad * jax.lax.rsqrt(var + EPS)
    shift = b_pad - mean * scale
    return jnp.stack([scale, shift], axis=0).astype(jnp.float32)


def init_basic_block_params(key, in_chann, out_chann, stride):
    k1, k2, k3 = jax.random.split(key, 3)
    params = {
        # conv weights stored HWIO so .reshape(kh*kw*Cin, Cout) matches im2col order
        "w1": 0.1 * jax.random.normal(k1, (3, 3, in_chann, out_chann), jnp.float32),
        "g1": jnp.ones((out_chann,), jnp.float32),
        "b1": jnp.zeros((out_chann,), jnp.float32),
        "w2": 0.1 * jax.random.normal(k2, (3, 3, out_chann, out_chann), jnp.float32),
        "g2": jnp.ones((out_chann,), jnp.float32),
        "b2": jnp.zeros((out_chann,), jnp.float32),
    }
    if in_chann != out_chann or stride != 1:
        params["wd"] = 0.1 * jax.random.normal(k3, (1, 1, in_chann, out_chann), jnp.float32)
        params["gd"] = jnp.ones((out_chann,), jnp.float32)
        params["bd"] = jnp.zeros((out_chann,), jnp.float32)
    return params


def basic_block_forward(x_nchw, params, stride):
    # Public API is NCHW to match PyTorch; accepting NHWC directly would save
    # two HBM transpose round trips.
    x = jnp.transpose(x_nchw, (0, 2, 3, 1)).astype(jnp.float32)   # NHWC f32
    n, h, w, cin = x.shape
    cout = params["w1"].shape[-1]

    ho = (h + 2 - 3) // stride + 1
    wo = (w + 2 - 3) // stride + 1
    m = n * ho * wo
    c_p = _round_up(cout, LANE)
    cin_p = _round_up(cin, LANE)
    k1_p = _round_up(9 * cin, LANE)
    k2_p = _round_up(9 * cout, LANE)
    downsample = "wd" in params

    # --- VMEM-budgeted tile selection (shared by every pass so m_p agrees) ---
    stream1 = k1_p * 2 + 2 * c_p * 4                       # conv1 pass rows
    if downsample:
        stream1 += cin_p * 2 + c_p * 4                     # + fused 1x1 conv rows
    stream2 = k2_p * 2 + c_p * 4                           # conv2 pass rows
    stream3 = 3 * c_p * 4                                  # final fused pass rows
    resident = 2 * 2 * c_p * max(k1_p + (cin_p if downsample else 0), k2_p)
    tile_m = _pick_tile_m(m, max(stream1, stream2, stream3), resident)
    m_p = _round_up(m, tile_m)

    def pad_gb(name):
        return jnp.pad(params[name], (0, c_p - cout))

    x_bf = x.astype(jnp.bfloat16)

    # ---- conv1 (+ fused downsample 1x1 conv) : matmul + BN partial stats ----
    w1 = _pad2d(params["w1"].reshape(9 * cin, cout), k1_p, c_p).astype(jnp.bfloat16)
    p1, _ = im2col_3x3(x_bf, stride)
    p1 = _pad2d(p1, m_p, k1_p)

    if downsample:
        wd = _pad2d(params["wd"].reshape(cin, cout), cin_p, c_p).astype(jnp.bfloat16)
        xs = x_bf[:, ::stride, ::stride, :].reshape(m, cin)
        xs = _pad2d(xs, m_p, cin_p)
        y1_raw, s1, yr_raw, sr = conv_stats_dual(p1, w1, xs, wd, tile_m)
        ar = _bn_affine(sr, pad_gb("gd"), pad_gb("bd"), float(m))
    else:
        y1_raw, s1 = conv_stats(p1, w1, tile_m)

    # ---- bn1 + relu (pass 2) ----
    a1 = _bn_affine(s1, pad_gb("g1"), pad_gb("b1"), float(m))
    y1 = bn_relu(y1_raw, a1, tile_m, jnp.bfloat16)       # (m_p, c_p) bf16
    y1 = y1[:m, :cout].reshape(n, ho, wo, cout)

    # ---- conv2 : matmul + BN partial stats ----
    w2 = _pad2d(params["w2"].reshape(9 * cout, cout), k2_p, c_p).astype(jnp.bfloat16)
    p2, _ = im2col_3x3(y1, 1)
    p2 = _pad2d(p2, m_p, k2_p)
    y2_raw, s2 = conv_stats(p2, w2, tile_m)
    a2 = _bn_affine(s2, pad_gb("g2"), pad_gb("b2"), float(m))

    # ---- bn2 + relu + residual add + relu (fully fused final pass) ----
    if downsample:
        out = bn_relu_add_bn_relu(y2_raw, a2, yr_raw, ar, tile_m)
    else:
        res = _pad2d(x.reshape(m, cout), m_p, c_p)        # identity residual (f32)
        out = bn_relu_add_relu(y2_raw, a2, res, tile_m)

    out = out[:m, :cout].reshape(n, ho, wo, cout)
    return jnp.transpose(out, (0, 3, 1, 2))               # back to NCHW


# ---------------------------------------------------------------------------
# Pure-JAX reference (same bf16-input / f32-accumulate precision policy)
# ---------------------------------------------------------------------------
def _ref_conv(x_nchw, w_hwio, stride, pad):
    return jax.lax.conv_general_dilated(
        x_nchw.astype(jnp.bfloat16), w_hwio.astype(jnp.bfloat16),
        (stride, stride), ((pad, pad), (pad, pad)),
        dimension_numbers=("NCHW", "HWIO", "NCHW"),
        preferred_element_type=jnp.float32)


def _ref_bn(x, g, b):
    mean = x.mean(axis=(0, 2, 3), keepdims=True)
    var = ((x - mean) ** 2).mean(axis=(0, 2, 3), keepdims=True)
    return ((x - mean) * jax.lax.rsqrt(var + EPS) * g.reshape(1, -1, 1, 1)
            + b.reshape(1, -1, 1, 1))


def basic_block_reference(x_nchw, params, stride):
    x = x_nchw.astype(jnp.float32)
    residual = x
    y = jnp.maximum(_ref_bn(_ref_conv(x, params["w1"], stride, 1),
                            params["g1"], params["b1"]), 0.0)
    y = jnp.maximum(_ref_bn(_ref_conv(y, params["w2"], 1, 1),
                            params["g2"], params["b2"]), 0.0)
    if "wd" in params:
        residual = _ref_bn(_ref_conv(x, params["wd"], stride, 0),
                           params["gd"], params["bd"])
    return jnp.maximum(residual + y, 0.0)


# ---------------------------------------------------------------------------
if __name__ == "__main__":
    key = jax.random.PRNGKey(0)
    kx1, kx2, kp1, kp2 = jax.random.split(key, 4)

    # Config 1: downsample path (channel change + stride 2).
    N, C_IN, C_OUT, H, W, STRIDE = 2, 4, 8, 16, 16, 2
    x = jax.random.normal(kx1, (N, C_IN, H, W), jnp.float32)
    params = init_basic_block_params(kp1, C_IN, C_OUT, STRIDE)
    out = jax.block_until_ready(basic_block_forward(x, params, STRIDE))
    ref = jax.block_until_ready(basic_block_reference(x, params, STRIDE))
    assert out.shape == ref.shape == (N, C_OUT, H // STRIDE, W // STRIDE), out.shape
    np.testing.assert_allclose(np.asarray(out), np.asarray(ref), rtol=1e-2, atol=1e-2)

    # Config 2: identity residual path (same channels, stride 1).
    N2, C2, H2, W2 = 2, 8, 16, 16
    x2 = jax.random.normal(kx2, (N2, C2, H2, W2), jnp.float32)
    params2 = init_basic_block_params(kp2, C2, C2, 1)
    out2 = jax.block_until_ready(basic_block_forward(x2, params2, 1))
    ref2 = jax.block_until_ready(basic_block_reference(x2, params2, 1))
    assert out2.shape == ref2.shape == (N2, C2, H2, W2), out2.shape
    np.testing.assert_allclose(np.asarray(out2), np.asarray(ref2), rtol=1e-2, atol=1e-2)

    print("KERNEL_OK")
</pallas_src>

<mosaic_0001>
module attributes {stable_mosaic.version = 11 : i64} {
  func.func @_conv_stats_dual_kernel(%arg0: i32, %arg1: memref<128x128xbf16, #tpu.memory_space<vmem>>, %arg2: memref<128x128xbf16, #tpu.memory_space<vmem>>, %arg3: memref<128x128xbf16, #tpu.memory_space<vmem>>, %arg4: memref<128x128xbf16, #tpu.memory_space<vmem>>, %arg5: memref<128x128xf32, #tpu.memory_space<vmem>>, %arg6: memref<1x2x128xf32, #tpu.memory_space<vmem>>, %arg7: memref<128x128xf32, #tpu.memory_space<vmem>>, %arg8: memref<1x2x128xf32, #tpu.memory_space<vmem>>) attributes {dimension_semantics = [#tpu.dimension_semantics<parallel>], iteration_bounds = array<i64: 1>, scalar_prefetch = 0 : i64, scratch_operands = 0 : i64, tpu.core_type = #tpu.core_type<tc>, window_params = [{transform_indices = @transform_0, window_bounds = array<i64: 128, 128>}, {pipeline_mode = #tpu.pipeline_mode<synchronous>, transform_indices = @transform_1, window_bounds = array<i64: 128, 128>}, {transform_indices = @transform_2, window_bounds = array<i64: 128, 128>}, {pipeline_mode = #tpu.pipeline_mode<synchronous>, transform_indices = @transform_3, window_bounds = array<i64: 128, 128>}, {transform_indices = @transform_4, window_bounds = array<i64: 128, 128>}, {transform_indices = @transform_5, window_bounds = array<i64: 1, 2, 128>}, {transform_indices = @transform_6, window_bounds = array<i64: 128, 128>}, {transform_indices = @transform_7, window_bounds = array<i64: 1, 2, 128>}]} {
    %c0 = arith.constant 0 : index
    %c0_0 = arith.constant 0 : index
    %0 = vector.load %arg1[%c0, %c0_0] : memref<128x128xbf16, #tpu.memory_space<vmem>>, vector<128x128xbf16>
    %c0_1 = arith.constant 0 : index
    %c0_2 = arith.constant 0 : index
    %1 = vector.load %arg2[%c0_1, %c0_2] : memref<128x128xbf16, #tpu.memory_space<vmem>>, vector<128x128xbf16>
    %cst = arith.constant dense<0.000000e+00> : vector<128x128xf32>
    %2 = tpu.matmul %0, %1, %cst {dimension_numbers = #tpu.dot_dimension_numbers<[1], [0], [0], [1], [0, 0, 1, 1], [], []>} : vector<128x128xbf16>, vector<128x128xbf16>, vector<128x128xf32> -> vector<128x128xf32>
    %c0_3 = arith.constant 0 : index
    %c0_4 = arith.constant 0 : index
    %3 = vector.load %arg5[%c0_3, %c0_4] : memref<128x128xf32, #tpu.memory_space<vmem>>, vector<128x128xf32>
    tpu.vector_store %arg5[%c0_3, %c0_4], %2 {strides = array<i32>} : memref<128x128xf32, #tpu.memory_space<vmem>>, vector<128x128xf32>,
    %cst_5 = arith.constant dense<0.000000e+00> : vector<128xf32>
    %4 = vector.multi_reduction <add>, %2, %cst_5 [0] : vector<128x128xf32> to vector<128xf32>
    %5 = vector.shape_cast %4 : vector<128xf32> to vector<1x128xf32>
    %6 = arith.mulf %2, %2 : vector<128x128xf32>
    %cst_6 = arith.constant dense<0.000000e+00> : vector<128xf32>
    %7 = vector.multi_reduction <add>, %6, %cst_6 [0] : vector<128x128xf32> to vector<128xf32>
    %8 = vector.shape_cast %7 : vector<128xf32> to vector<1x128xf32>
    %9 = tpu.concatenate %5, %8 in 0 : vector<1x128xf32>, vector<1x128xf32> -> vector<2x128xf32>
    %10 = vector.shape_cast %9 : vector<2x128xf32> to vector<1x2x128xf32>
    %c0_7 = arith.constant 0 : index
    %c0_8 = arith.constant 0 : index
    %c0_9 = arith.constant 0 : index
    %11 = vector.load %arg6[%c0_7, %c0_8, %c0_9] : memref<1x2x128xf32, #tpu.memory_space<vmem>>, vector<1x2x128xf32>
    tpu.vector_store %arg6[%c0_7, %c0_8, %c0_9], %10 {strides = array<i32>} : memref<1x2x128xf32, #tpu.memory_space<vmem>>, vector<1x2x128xf32>,
    %c0_10 = arith.constant 0 : index
    %c0_11 = arith.constant 0 : index
    %12 = vector.load %arg3[%c0_10, %c0_11] : memref<128x128xbf16, #tpu.memory_space<vmem>>, vector<128x128xbf16>
    %c0_12 = arith.constant 0 : index
    %c0_13 = arith.constant 0 : index
    %13 = vector.load %arg4[%c0_12, %c0_13] : memref<128x128xbf16, #tpu.memory_space<vmem>>, vector<128x128xbf16>
    %cst_14 = arith.constant dense<0.000000e+00> : vector<128x128xf32>
    %14 = tpu.matmul %12, %13, %cst_14 {dimension_numbers = #tpu.dot_dimension_numbers<[1], [0], [0], [1], [0, 0, 1, 1], [], []>} : vector<128x128xbf16>, vector<128x128xbf16>, vector<128x128xf32> -> vector<128x128xf32>
    %c0_15 = arith.constant 0 : index
    %c0_16 = arith.constant 0 : index
    %15 = vector.load %arg7[%c0_15, %c0_16] : memref<128x128xf32, #tpu.memory_space<vmem>>, vector<128x128xf32>
    tpu.vector_store %arg7[%c0_15, %c0_16], %14 {strides = array<i32>} : memref<128x128xf32, #tpu.memory_space<vmem>>, vector<128x128xf32>,
    %cst_17 = arith.constant dense<0.000000e+00> : vector<128xf32>
    %16 = vector.multi_reduction <add>, %14, %cst_17 [0] : vector<128x128xf32> to vector<128xf32>
    %17 = vector.shape_cast %16 : vector<128xf32> to vector<1x128xf32>
    %18 = arith.mulf %14, %14 : vector<128x128xf32>
    %cst_18 = arith.constant dense<0.000000e+00> : vector<128xf32>
    %19 = vector.multi_reduction <add>, %18, %cst_18 [0] : vector<128x128xf32> to vector<128xf32>
    %20 = vector.shape_cast %19 : vector<128xf32> to vector<1x128xf32>
    %21 = tpu.concatenate %17, %20 in 0 : vector<1x128xf32>, vector<1x128xf32> -> vector<2x128xf32>
    %22 = vector.shape_cast %21 : vector<2x128xf32> to vector<1x2x128xf32>
    %c0_19 = arith.constant 0 : index
    %c0_20 = arith.constant 0 : index
    %c0_21 = arith.constant 0 : index
    %23 = vector.load %arg8[%c0_19, %c0_20, %c0_21] : memref<1x2x128xf32, #tpu.memory_space<vmem>>, vector<1x2x128xf32>
    tpu.vector_store %arg8[%c0_19, %c0_20, %c0_21], %22 {strides = array<i32>} : memref<1x2x128xf32, #tpu.memory_space<vmem>>, vector<1x2x128xf32>,
    return
  }
  func.func @transform_0(%arg0: i32) -> (i32, i32) {
    %c0_i32 = arith.constant 0 : i32
    %c0_i32_0 = arith.constant 0 : i32
    return %arg0, %c0_i32 : i32, i32
  }
  func.func @transform_1(%arg0: i32) -> (i32, i32) {
    %c0_i32 = arith.constant 0 : i32
    %c0_i32_0 = arith.constant 0 : i32
    %c0_i32_1 = arith.constant 0 : i32
    return %c0_i32, %c0_i32_0 : i32, i32
  }
  func.func @transform_2(%arg0: i32) -> (i32, i32) {
    %c0_i32 = arith.constant 0 : i32
    %c0_i32_0 = arith.constant 0 : i32
    return %arg0, %c0_i32 : i32, i32
  }
  func.func @transform_3(%arg0: i32) -> (i32, i32) {
    %c0_i32 = arith.constant 0 : i32
    %c0_i32_0 = arith.constant 0 : i32
    %c0_i32_1 = arith.constant 0 : i32
    return %c0_i32, %c0_i32_0 : i32, i32
  }
  func.func @transform_4(%arg0: i32) -> (i32, i32) {
    %c0_i32 = arith.constant 0 : i32
    %c0_i32_0 = arith.constant 0 : i32
    return %arg0, %c0_i32 : i32, i32
  }
  func.func @transform_5(%arg0: i32) -> (i32, i32, i32) {
    %c0_i32 = arith.constant 0 : i32
    %c0_i32_0 = arith.constant 0 : i32
    %c0_i32_1 = arith.constant 0 : i32
    return %arg0, %c0_i32, %c0_i32_0 : i32, i32, i32
  }
  func.func @transform_6(%arg0: i32) -> (i32, i32) {
    %c0_i32 = arith.constant 0 : i32
    %c0_i32_0 = arith.constant 0 : i32
    return %arg0, %c0_i32 : i32, i32
  }
  func.func @transform_7(%arg0: i32) -> (i32, i32, i32) {
    %c0_i32 = arith.constant 0 : i32
    %c0_i32_0 = arith.constant 0 : i32
    %c0_i32_1 = arith.constant 0 : i32
    return %arg0, %c0_i32, %c0_i32_0 : i32, i32, i32
  }
}

</mosaic_0001>

<bundles_post_ra>
// kernel: tpu_custom_call.1
= control target key start
LH: loop header
LB: loop body
LE: loop exit
PB: predicated region body
PF: predicated region fallthrough
CT: control target
= control target key end

     0   :  { %13 = vsyncpa [#allocation3], 0  ;;  %s1190_s0 = inlined_call_operand.hbm [shape: bf16[128,128], index: 0, kind: input, shape index: {}]   ;;  %s1191_s1 = inlined_call_operand.hbm [shape: bf16[128,128], index: 1, kind: input, shape index: {}]   ;;  %s1192_s2 = inlined_call_operand.hbm [shape: bf16[128,128], index: 2, kind: input, shape index: {}]   ;;  %s1193_s3 = inlined_call_operand.hbm [shape: bf16[128,128], index: 3, kind: input, shape index: {}]   ;;  %s1194_s4 = inlined_call_operand.hbm [shape: f32[128,128], index: 4, kind: output, shape index: {0}]   ;;  %s1195_s5 = inlined_call_operand.hbm [shape: f32[1,2,128], index: 5, kind: output, shape index: {1}]   ;;  %s1196_s6 = inlined_call_operand.hbm [shape: f32[128,128], index: 6, kind: output, shape index: {2}]   ;;  %s1197_s7 = inlined_call_operand.hbm [shape: f32[1,2,128], index: 7, kind: output, shape index: {3}]  }
   0x1   :  { %14 = vsyncpa [#allocation6], 0 }
   0x2   :  { %15 = vsyncpa [#allocation9], 0 }
   0x3   :  { %16 = vsyncpa [#allocation4], 0 }
   0x4   :  { %17 = vsyncpa [#allocation12], 0 }
   0x5   :  { %18 = vsyncpa [#allocation15], 0  ;;  %s1089_s24 = smov [#allocation5]   ;;  %s1090_s26 = smov [#allocation2]  }
   0x6   :  { %s36_s25 = sshll.u32 %s1089_s24, 4  ;;  %s24_s27 = sshll.u32 %s1090_s26, 4  ;;  %s37_s25 = int_to_ptr.vmem [resolvable:$true] %s36_s25  ;;  %s25_s27 = int_to_ptr.vmem [resolvable:$true] %s24_s27 }
   0x7   :  { %s925_s28 = scalar_lea.vmem %s37_s25, 1024  ;;  %p930_p1 = scmp.lt.s32.totalorder %s37_s25, %s37_s25 }
   0x8   :  { %p926_p0 = scmp.ne.s32.totalorder %s37_s25, %s925_s28  ;;  %p931_p2 = scmp.lt.s32.totalorder %s925_s28, %s925_s28 }
   0xa   :  { %p932_p3 = por %p931_p2, %p930_p1 }
   0xc   :  { %p933_p4 = pnand %p932_p3, %p926_p0 }
   0xe   :  { %936 = shalt.err (!%p933_p4)
}
   0xf   :  { %s1091_s29 = smov 64   ;;  %s1092_s30 = smov 4  }
  0x10   :  { %42 = dma.hbm_to_vmem [thread:$0]  %s1191_s1, 1024, %s37_s25, [#allocation6], %s1091_s29, %s1091_s29, %s1092_s30  }
  0x11   :  { %s945_s10 = scalar_lea.vmem %s25_s27, 1024  ;;  %p950_p6 = scmp.lt.s32.totalorder %s25_s27, %s25_s27 }
  0x12   :  { %p946_p5 = scmp.ne.s32.totalorder %s25_s27, %s945_s10  ;;  %p951_p7 = scmp.lt.s32.totalorder %s945_s10, %s945_s10 }
  0x14   :  { %p952_p8 = por %p951_p7, %p950_p6 }
  0x16   :  { %p953_p9 = pnand %p952_p8, %p946_p5 }
  0x18   :  { %956 = shalt.err (!%p953_p9)
}
  0x19   :  { %30 = dma.hbm_to_vmem [thread:$0]  %s1190_s0, 1024, %s25_s27, [#allocation3], %s1091_s29, %s1091_s29, %s1092_s30  }
  0x1a   :  { %s1093_s13 = smov [#allocation7]   ;;  %s1094_s15 = smov [#allocation8]  }
  0x1b   :  { %s48_s14 = sshll.u32 %s1093_s13, 4  ;;  %s60_s16 = sshll.u32 %s1094_s15, 4  ;;  %s49_s14 = int_to_ptr.vmem [resolvable:$true] %s48_s14  ;;  %s61_s16 = int_to_ptr.vmem [resolvable:$true] %s60_s16 }
  0x1c   :  { %s965_s1 = scalar_lea.vmem %s49_s14, 1024  ;;  %p970_p11 = scmp.lt.s32.totalorder %s49_s14, %s49_s14 }
  0x1d   :  { %p966_p10 = scmp.ne.s32.totalorder %s49_s14, %s965_s1  ;;  %p971_p12 = scmp.lt.s32.totalorder %s965_s1, %s965_s1 }
  0x1f   :  { %p972_p13 = por %p971_p12, %p970_p11 }
  0x21   :  { %p973_p0 = pnand %p972_p13, %p966_p10 }
  0x23   :  { %976 = shalt.err (!%p973_p0)
}
  0x24   :  { %54 = dma.hbm_to_vmem [thread:$0]  %s1192_s2, 1024, %s49_s14, [#allocation6], %s1091_s29, %s1091_s29, %s1092_s30  }
  0x25   :  { %s985_s0 = scalar_lea.vmem %s61_s16, 1024  ;;  %p990_p2 = scmp.lt.s32.totalorder %s61_s16, %s61_s16 }
  0x26   :  { %p986_p1 = scmp.ne.s32.totalorder %s61_s16, %s985_s0  ;;  %p991_p3 = scmp.lt.s32.totalorder %s985_s0, %s985_s0 }
  0x28   :  { %p992_p4 = por %p991_p3, %p990_p2 }
  0x2a   :  { %p993_p5 = pnand %p992_p4, %p986_p1 }
  0x2c   :  { %996 = shalt.err (!%p993_p5)
}
  0x2d   :  { %66 = dma.hbm_to_vmem [thread:$0]  %s1193_s3, 1024, %s61_s16, [#allocation9], %s1091_s29, %s1091_s29, %s1092_s30  }
  0x2e   :  { %1077 = dma.done.wait [#allocation3], 1024  }
  0x2f   :  { %1078 = vsyncadd [#allocation3], 4294966272 }
  0x30   :  { %1079 = dma.done.wait [#allocation6], 2048  }
  0x31   :  { %1080 = vsyncadd [#allocation6], 4294965248 }
  0x32   :  { %1081 = dma.done.wait [#allocation9], 1024  }
  0x33   :  { %1082 = vsyncadd [#allocation9], 4294966272  ;;  %v885_v0 = vld [vmem:[#allocation5 + $0x38] sm:$0xff]   ;;  %v887_v2 = vld [vmem:[#allocation5 + $0x30] sm:$0xff]   ;;  %s1095_s2 = smov [#allocation10]  }
  0x34   :  { %v886_v1 = vld [vmem:[#allocation8 + $0x38] sm:$0xff]   ;;  %809 = vmatprep.subr.bf16.mxu0 %v885_v0  ;;  %v888_v3 = vld [vmem:[#allocation8 + $0x30] sm:$0xff]   ;;  %v889_v4 = vld [vmem:[#allocation5 + $0x28] sm:$0xff]   ;;  %s688_s3 = sshll.u32 %s1095_s2, 4  ;;  %s1165_s3 = int_to_ptr.vmem [resolvable:$true] %s688_s3 }
  0x35   :  { %841 = vmatprep.subr.bf16.mxu1 %v886_v1  ;;  %810 = vmatpush3.bf16.msra.mxu0 %v885_v0  ;;  %v890_v5 = vld [vmem:[#allocation8 + $0x28] sm:$0xff]   ;;  %v891_v6 = vld [vmem:[#allocation5 + $0x20] sm:$0xff]   ;;  %v893_v8 = vld [vmem:[#allocation5 + $0x18] sm:$0xff]   ;;  %s997_s21 = scalar_lea.vmem %s1165_s3, 2048  ;;  %p1002_p7 = scmp.lt.s32.totalorder %s1165_s3, %s1165_s3 }
  0x36   :  { %842 = vmatpush3.bf16.msra.mxu1 %v886_v1  ;;  %811 = vmatprep.subr.bf16.mxu0 %v887_v2  ;;  %v892_v7 = vld [vmem:[#allocation8 + $0x20] sm:$0xff]   ;;  %v894_v9 = vld [vmem:[#allocation8 + $0x18] sm:$0xff]   ;;  %v895_v10 = vld [vmem:[#allocation5 + $0x10] sm:$0xff]   ;;  %p998_p6 = scmp.ne.s32.totalorder %s1165_s3, %s997_s21  ;;  %p1003_p8 = scmp.lt.s32.totalorder %s997_s21, %s997_s21 }
  0x37   :  { %843 = vmatprep.subr.bf16.mxu1 %v888_v3  ;;  %v896_v11 = vld [vmem:[#allocation8 + $0x10] sm:$0xff]   ;;  %v901_v12 = vld [vmem:[#allocation2] sm:$0xff]   ;;  %v897_v14 = vld [vmem:[#allocation5 + $0x8] sm:$0xff]  }
  0x38   :  { %v902_v13 = vld [vmem:[#allocation7] sm:$0xff]   ;;  %825 = vmatprep.mubr.bf16.mxu0 %v901_v12  ;;  %v898_v15 = vld [vmem:[#allocation8 + $0x8] sm:$0xff]   ;;  %v905_v20 = vld [vmem:[#allocation2 + $0x10] sm:$0xff]   ;;  %p1004_p9 = por %p1003_p8, %p1002_p7 }
  0x39   :  { %812 = vmatpush3.bf16.msra.mxu0 %v887_v2  ;;  %857 = vmatprep.mubr.bf16.mxu1 %v902_v13  ;;  %v899_v16 = vld [vmem:[#allocation5] sm:$0xff]   ;;  %v903_v18 = vld [vmem:[#allocation2 + $0x8] sm:$0xff]   ;;  %v906_v21 = vld [vmem:[#allocation7 + $0x10] sm:$0xff]  }
  0x3a   :  { %844 = vmatpush3.bf16.msra.mxu1 %v888_v3  ;;  %813 = vmatprep.subr.bf16.mxu0 %v889_v4  ;;  %v900_v17 = vld [vmem:[#allocation8] sm:$0xff]   ;;  %v904_v19 = vld [vmem:[#allocation7 + $0x8] sm:$0xff]   ;;  %v907_v22 = vld [vmem:[#allocation2 + $0x18] sm:$0xff]   ;;  %p1005_p10 = pnand %p1004_p9, %p998_p6 }
  0x3b   :  { %845 = vmatprep.subr.bf16.mxu1 %v890_v5  ;;  %v908_v23 = vld [vmem:[#allocation7 + $0x18] sm:$0xff]   ;;  %v909_v24 = vld [vmem:[#allocation2 + $0x20] sm:$0xff]   ;;  %v911_v26 = vld [vmem:[#allocation2 + $0x28] sm:$0xff]  }
  0x3c   :  { %v910_v25 = vld [vmem:[#allocation7 + $0x20] sm:$0xff]   ;;  %v912_v27 = vld [vmem:[#allocation7 + $0x28] sm:$0xff]   ;;  %v913_v28 = vld [vmem:[#allocation2 + $0x30] sm:$0xff]  }
  0x3d   :  { %814 = vmatpush3.bf16.msra.mxu0 %v889_v4  ;;  %v914_v29 = vld [vmem:[#allocation7 + $0x30] sm:$0xff]   ;;  %v915_v30 = vld [vmem:[#allocation2 + $0x38] sm:$0xff]  }
  0x3e   :  { %846 = vmatpush3.bf16.msra.mxu1 %v890_v5  ;;  %815 = vmatprep.subr.bf16.mxu0 %v891_v6  ;;  %v916_v31 = vld [vmem:[#allocation7 + $0x38] sm:$0xff]  }
  0x3f   :  { %847 = vmatprep.subr.bf16.mxu1 %v892_v7 }
  0x41   :  { %816 = vmatpush3.bf16.msra.mxu0 %v891_v6 }
  0x42   :  { %848 = vmatpush3.bf16.msra.mxu1 %v892_v7  ;;  %817 = vmatprep.subr.bf16.mxu0 %v893_v8 }
  0x43   :  { %849 = vmatprep.subr.bf16.mxu1 %v894_v9 }
  0x45   :  { %818 = vmatpush3.bf16.msra.mxu0 %v893_v8 }
  0x46   :  { %850 = vmatpush3.bf16.msra.mxu1 %v894_v9  ;;  %819 = vmatprep.subr.bf16.mxu0 %v895_v10 }
  0x47   :  { %851 = vmatprep.subr.bf16.mxu1 %v896_v11 }
  0x49   :  { %820 = vmatpush3.bf16.msra.mxu0 %v895_v10 }
  0x4a   :  { %852 = vmatpush3.bf16.msra.mxu1 %v896_v11  ;;  %821 = vmatprep.subr.bf16.mxu0 %v897_v14 }
  0x4b   :  { %853 = vmatprep.subr.bf16.mxu1 %v898_v15 }
  0x4d   :  { %822 = vmatpush3.bf16.msra.mxu0 %v897_v14 }
  0x4e   :  { %854 = vmatpush3.bf16.msra.mxu1 %v898_v15  ;;  %823 = vmatprep.subr.bf16.mxu0 %v899_v16 }
  0x4f   :  { %855 = vmatprep.subr.bf16.mxu1 %v900_v17 }
  0x51   :  { %824 = vmatpush3.bf16.msra.mxu0 %v899_v16 }
  0x52   :  { %856 = vmatpush3.bf16.msra.mxu1 %v900_v17 }
  0x54   :  { %826 = vmatmul.mubr.bf16.vlgmr.msra.gmra.mxu0 %v903_v18 }
  0x55   :  { %858 = vmatmul.mubr.bf16.vlgmr.msra.gmra.mxu1 %v904_v19  ;;  %829 = vmatprep.mubr.bf16.mxu0 %v905_v20 }
  0x56   :  { %861 = vmatprep.mubr.bf16.mxu1 %v906_v21 }
  0x5c   :  { %830 = vmatmul.mubr.bf16.gmra.mxu0 %v907_v22 }
  0x5d   :  { %862 = vmatmul.mubr.bf16.gmra.mxu1 %v908_v23  ;;  %833 = vmatprep.mubr.bf16.mxu0 %v909_v24 }
  0x5e   :  { %865 = vmatprep.mubr.bf16.mxu1 %v910_v25 }
  0x64   :  { %834 = vmatmul.mubr.bf16.gmra.mxu0 %v911_v26 }
  0x65   :  { %866 = vmatmul.mubr.bf16.gmra.mxu1 %v912_v27  ;;  %837 = vmatprep.mubr.bf16.mxu0 %v913_v28 }
  0x66   :  { %869 = vmatprep.mubr.bf16.mxu1 %v914_v29 }
  0x6c   :  { %838 = vmatmul.mubr.bf16.gmra.mxu0 %v915_v30 }
  0x6d   :  { %870 = vmatmul.mubr.bf16.gmra.mxu1 %v916_v31 }
 0x114   :  { %v827_v32 = vpop.f32.mrf.mxu0 }
 0x115   :  { %307 = vst [vmem:[#allocation10 + $0x10] sm:$0xff] %v827_v32  ;;  %v859_v33 = vpop.f32.mrf.mxu1  ;;  %v344_v47 = vmul.f32 %v827_v32, %v827_v32 }
 0x116   :  { %609 = vst [vmem:[#allocation13 + $0x10] sm:$0xff] %v859_v33  ;;  %v242_v34 = vpop.f32.mrf.mxu0  ;;  %v646_v51 = vmul.f32 %v859_v33, %v859_v33 }
 0x117   :  { %305 = vst [vmem:[#allocation10] sm:$0xff] %v242_v34  ;;  %v544_v35 = vpop.f32.mrf.mxu1  ;;  %v342_v39 = vmul.f32 %v242_v34, %v242_v34 }
 0x118   :  { %607 = vst [vmem:[#allocation13] sm:$0xff] %v544_v35  ;;  %v828_v36 = vpop.f32.mrf.mxu0  ;;  %v644_v43 = vmul.f32 %v544_v35, %v544_v35 }
 0x119   :  { %308 = vst [vmem:[#allocation10 + $0x18] sm:$0xff] %v828_v36  ;;  %v860_v37 = vpop.f32.mrf.mxu1  ;;  %v345_v55 = vmul.f32 %v828_v36, %v828_v36 }
 0x11a   :  { %610 = vst [vmem:[#allocation13 + $0x18] sm:$0xff] %v860_v37  ;;  %v245_v38 = vpop.f32.mrf.mxu0  ;;  %v647_v59 = vmul.f32 %v860_v37, %v860_v37 }
 0x11b   :  { %306 = vst [vmem:[#allocation10 + $0x8] sm:$0xff] %v245_v38  ;;  %v321_v40 = vadd.f32 %v245_v38, %v242_v34  ;;  %v343_v41 = vmul.f32 %v245_v38, %v245_v38  ;;  %v547_v42 = vpop.f32.mrf.mxu1 }
 0x11c   :  { %608 = vst [vmem:[#allocation13 + $0x8] sm:$0xff] %v547_v42  ;;  %v623_v44 = vadd.f32 %v547_v42, %v544_v35  ;;  %v645_v45 = vmul.f32 %v547_v42, %v547_v42  ;;  %v831_v46 = vpop.f32.mrf.mxu0 }
 0x11d   :  { %v322_v48 = vadd.f32 %v827_v32, %v321_v40  ;;  %v358_v49 = vadd.f32 %v343_v41, %v342_v39  ;;  %311 = vst [vmem:[#allocation10 + $0x30] sm:$0xff] %v831_v46  ;;  %v863_v50 = vpop.f32.mrf.mxu1  ;;  %v348_v15 = vmul.f32 %v831_v46, %v831_v46 }
 0x11e   :  { %v624_v52 = vadd.f32 %v859_v33, %v623_v44  ;;  %v660_v53 = vadd.f32 %v645_v45, %v644_v43  ;;  %613 = vst [vmem:[#allocation13 + $0x30] sm:$0xff] %v863_v50  ;;  %v258_v54 = vpop.f32.mrf.mxu0  ;;  %v650_v19 = vmul.f32 %v863_v50, %v863_v50 }
 0x11f   :  { %v359_v56 = vadd.f32 %v358_v49, %v344_v47  ;;  %309 = vst [vmem:[#allocation10 + $0x20] sm:$0xff] %v258_v54  ;;  %v323_v57 = vadd.f32 %v828_v36, %v322_v48  ;;  %v560_v58 = vpop.f32.mrf.mxu1  ;;  %v346_v0 = vmul.f32 %v258_v54, %v258_v54 }
 0x120   :  { %v661_v60 = vadd.f32 %v660_v53, %v646_v51  ;;  %611 = vst [vmem:[#allocation13 + $0x20] sm:$0xff] %v560_v58  ;;  %v625_v61 = vadd.f32 %v860_v37, %v624_v52  ;;  %v832_v62 = vpop.f32.mrf.mxu0  ;;  %v648_v4 = vmul.f32 %v560_v58, %v560_v58 }
 0x121   :  { %v324_v63 = vadd.f32 %v323_v57, %v258_v54  ;;  %v360_v1 = vadd.f32 %v359_v56, %v345_v55  ;;  %312 = vst [vmem:[#allocation10 + $0x38] sm:$0xff] %v832_v62  ;;  %v864_v2 = vpop.f32.mrf.mxu1  ;;  %v349_v23 = vmul.f32 %v832_v62, %v832_v62 }
 0x122   :  { %v626_v3 = vadd.f32 %v625_v61, %v560_v58  ;;  %v662_v5 = vadd.f32 %v661_v60, %v647_v59  ;;  %614 = vst [vmem:[#allocation13 + $0x38] sm:$0xff] %v864_v2  ;;  %v261_v6 = vpop.f32.mrf.mxu0  ;;  %v651_v27 = vmul.f32 %v864_v2, %v864_v2 }
 0x123   :  { %v361_v7 = vadd.f32 %v360_v1, %v346_v0  ;;  %310 = vst [vmem:[#allocation10 + $0x28] sm:$0xff] %v261_v6  ;;  %v325_v8 = vadd.f32 %v324_v63, %v261_v6  ;;  %v347_v9 = vmul.f32 %v261_v6, %v261_v6  ;;  %v563_v10 = vpop.f32.mrf.mxu1 }
 0x124   :  { %v663_v11 = vadd.f32 %v662_v5, %v648_v4  ;;  %612 = vst [vmem:[#allocation13 + $0x28] sm:$0xff] %v563_v10  ;;  %v627_v12 = vadd.f32 %v626_v3, %v563_v10  ;;  %v649_v13 = vmul.f32 %v563_v10, %v563_v10  ;;  %v835_v14 = vpop.f32.mrf.mxu0 }
 0x125   :  { %v326_v16 = vadd.f32 %v831_v46, %v325_v8  ;;  %v362_v17 = vadd.f32 %v361_v7, %v347_v9  ;;  %315 = vst [vmem:[#allocation10 + $0x50] sm:$0xff] %v835_v14  ;;  %v867_v18 = vpop.f32.mrf.mxu1  ;;  %v352_v47 = vmul.f32 %v835_v14, %v835_v14 }
 0x126   :  { %v628_v20 = vadd.f32 %v863_v50, %v627_v12  ;;  %v664_v21 = vadd.f32 %v663_v11, %v649_v13  ;;  %617 = vst [vmem:[#allocation13 + $0x50] sm:$0xff] %v867_v18  ;;  %v274_v22 = vpop.f32.mrf.mxu0  ;;  %v654_v51 = vmul.f32 %v867_v18, %v867_v18 }
 0x127   :  { %v363_v24 = vadd.f32 %v362_v17, %v348_v15  ;;  %313 = vst [vmem:[#allocation10 + $0x40] sm:$0xff] %v274_v22  ;;  %v327_v25 = vadd.f32 %v832_v62, %v326_v16  ;;  %v576_v26 = vpop.f32.mrf.mxu1  ;;  %v350_v32 = vmul.f32 %v274_v22, %v274_v22 }
 0x128   :  { %v665_v28 = vadd.f32 %v664_v21, %v650_v19  ;;  %615 = vst [vmem:[#allocation13 + $0x40] sm:$0xff] %v576_v26  ;;  %v629_v29 = vadd.f32 %v864_v2, %v628_v20  ;;  %v836_v30 = vpop.f32.mrf.mxu0  ;;  %v652_v36 = vmul.f32 %v576_v26, %v576_v26 }
 0x129   :  { %v328_v31 = vadd.f32 %v327_v25, %v274_v22  ;;  %v364_v33 = vadd.f32 %v363_v24, %v349_v23  ;;  %316 = vst [vmem:[#allocation10 + $0x58] sm:$0xff] %v836_v30  ;;  %v868_v34 = vpop.f32.mrf.mxu1  ;;  %v353_v55 = vmul.f32 %v836_v30, %v836_v30 }
 0x12a   :  { %v630_v35 = vadd.f32 %v629_v29, %v576_v26  ;;  %v666_v37 = vadd.f32 %v665_v28, %v651_v27  ;;  %618 = vst [vmem:[#allocation13 + $0x58] sm:$0xff] %v868_v34  ;;  %v277_v38 = vpop.f32.mrf.mxu0  ;;  %v655_v59 = vmul.f32 %v868_v34, %v868_v34 }
 0x12b   :  { %v365_v39 = vadd.f32 %v364_v33, %v350_v32  ;;  %314 = vst [vmem:[#allocation10 + $0x48] sm:$0xff] %v277_v38  ;;  %v329_v40 = vadd.f32 %v328_v31, %v277_v38  ;;  %v351_v41 = vmul.f32 %v277_v38, %v277_v38  ;;  %v579_v42 = vpop.f32.mrf.mxu1 }
 0x12c   :  { %v667_v43 = vadd.f32 %v666_v37, %v652_v36  ;;  %616 = vst [vmem:[#allocation13 + $0x48] sm:$0xff] %v579_v42  ;;  %v631_v44 = vadd.f32 %v630_v35, %v579_v42  ;;  %v653_v45 = vmul.f32 %v579_v42, %v579_v42  ;;  %v839_v46 = vpop.f32.mrf.mxu0 }
 0x12d   :  { %v330_v48 = vadd.f32 %v835_v14, %v329_v40  ;;  %v366_v49 = vadd.f32 %v365_v39, %v351_v41  ;;  %319 = vst [vmem:[#allocation10 + $0x70] sm:$0xff] %v839_v46  ;;  %v871_v50 = vpop.f32.mrf.mxu1 }
 0x12e   :  { %v632_v52 = vadd.f32 %v867_v18, %v631_v44  ;;  %v668_v53 = vadd.f32 %v667_v43, %v653_v45  ;;  %621 = vst [vmem:[#allocation13 + $0x70] sm:$0xff] %v871_v50  ;;  %v290_v54 = vpop.f32.mrf.mxu0 }
 0x12f   :  { %v367_v56 = vadd.f32 %v366_v49, %v352_v47  ;;  %317 = vst [vmem:[#allocation10 + $0x60] sm:$0xff] %v290_v54  ;;  %v331_v57 = vadd.f32 %v836_v30, %v330_v48  ;;  %v592_v58 = vpop.f32.mrf.mxu1  ;;  %v354_v0 = vmul.f32 %v290_v54, %v290_v54 }
 0x130   :  { %v669_v60 = vadd.f32 %v668_v53, %v654_v51  ;;  %619 = vst [vmem:[#allocation13 + $0x60] sm:$0xff] %v592_v58  ;;  %v633_v61 = vadd.f32 %v868_v34, %v632_v52  ;;  %v840_v62 = vpop.f32.mrf.mxu0  ;;  %v656_v4 = vmul.f32 %v592_v58, %v592_v58 }
 0x131   :  { %v332_v63 = vadd.f32 %v331_v57, %v290_v54  ;;  %v368_v1 = vadd.f32 %v367_v56, %v353_v55  ;;  %320 = vst [vmem:[#allocation10 + $0x78] sm:$0xff] %v840_v62  ;;  %v872_v2 = vpop.f32.mrf.mxu1 }
 0x132   :  { %v634_v3 = vadd.f32 %v633_v61, %v592_v58  ;;  %v670_v5 = vadd.f32 %v669_v60, %v655_v59  ;;  %622 = vst [vmem:[#allocation13 + $0x78] sm:$0xff] %v872_v2  ;;  %v293_v6 = vpop.f32.mrf.mxu0 }
 0x133   :  { %v369_v7 = vadd.f32 %v368_v1, %v354_v0  ;;  %318 = vst [vmem:[#allocation10 + $0x68] sm:$0xff] %v293_v6  ;;  %v333_v8 = vadd.f32 %v332_v63, %v293_v6  ;;  %v355_v9 = vmul.f32 %v293_v6, %v293_v6  ;;  %v595_v10 = vpop.f32.mrf.mxu1 }
 0x134   :  { %v671_v11 = vadd.f32 %v670_v5, %v656_v4  ;;  %620 = vst [vmem:[#allocation13 + $0x68] sm:$0xff] %v595_v10  ;;  %v635_v12 = vadd.f32 %v634_v3, %v595_v10  ;;  %v657_v13 = vmul.f32 %v595_v10, %v595_v10 }
 0x135   :  { %1008 = shalt.err (!%p1005_p10)
}
 0x136   :  { %s1096_s22 = smov 128   ;;  %s1097_s23 = smov 8   ;;  %v356_v14 = vmul.f32 %v839_v46, %v839_v46  ;;  %v334_v15 = vadd.f32 %v839_v46, %v333_v8  ;;  %v370_v16 = vadd.f32 %v369_v7, %v355_v9  ;;  %v658_v17 = vmul.f32 %v871_v50, %v871_v50 }
 0x137   :  { %694 = dma.vmem_to_hbm [thread:$0]  %s1165_s3, 2048, %s1194_s4, [#allocation4], %s1096_s22, %s1096_s22, %s1097_s23   ;;  %v636_v18 = vadd.f32 %v871_v50, %v635_v12  ;;  %v672_v19 = vadd.f32 %v671_v11, %v657_v13  ;;  %v357_v20 = vmul.f32 %v840_v62, %v840_v62  ;;  %v659_v23 = vmul.f32 %v872_v2, %v872_v2 }
 0x138   :  { %v335_v21 = vadd.f32 %v840_v62, %v334_v15  ;;  %v371_v22 = vadd.f32 %v370_v16, %v356_v14  ;;  %s1098_s4 = smov [#allocation11]   ;;  %vm379_vm0 = vcmask 1040384   ;;  %s1099_s27 = smov [#allocation13]  }
 0x139   :  { %v637_v24 = vadd.f32 %v872_v2, %v636_v18  ;;  %v673_v25 = vadd.f32 %v672_v19, %v658_v17  ;;  %s701_s26 = sshll.u32 %s1098_s4, 4  ;;  %s710_s28 = sshll.u32 %s1099_s27, 4  ;;  %s702_s26 = int_to_ptr.vmem [resolvable:$true] %s701_s26  ;;  %s711_s28 = int_to_ptr.vmem [resolvable:$true] %s710_s28 }
 0x13a   :  { %v336_v26 = vrot.slane %v335_v21, 4  ;;  %v372_v27 = vadd.f32 %v371_v22, %v357_v20  ;;  %s1100_s29 = smov [#allocation14]   ;;  %s1017_s8 = scalar_lea.vmem %s702_s26, 32 }
 0x13b   :  { %v638_v28 = vrot.slane %v637_v24, 4  ;;  %v674_v29 = vadd.f32 %v673_v25, %v659_v23  ;;  %s723_s30 = sshll.u32 %s1100_s29, 4  ;;  %p1018_p11 = scmp.ne.s32.totalorder %s702_s26, %s1017_s8  ;;  %s724_s30 = int_to_ptr.vmem [resolvable:$true] %s723_s30 }
 0x13c   :  { %v337_v30 = vadd.f32 %v336_v26, %v335_v21  ;;  %v373_v31 = vrot.slane %v372_v27, 4  ;;  %p1022_p12 = scmp.lt.s32.totalorder %s702_s26, %s702_s26  ;;  %p1023_p13 = scmp.lt.s32.totalorder %s1017_s8, %s1017_s8 }
 0x13d   :  { %v639_v32 = vadd.f32 %v638_v28, %v637_v24  ;;  %v675_v33 = vrot.slane %v674_v29, 4 }
 0x13e   :  { %v338_v34 = vrot.slane %v337_v30, 2  ;;  %v374_v35 = vadd.f32 %v373_v31, %v372_v27  ;;  %p1024_p0 = por %p1023_p13, %p1022_p12 }
 0x13f   :  { %v640_v36 = vrot.slane %v639_v32, 2  ;;  %v676_v37 = vadd.f32 %v675_v33, %v674_v29 }
 0x140   :  { %v339_v38 = vadd.f32 %v338_v34, %v337_v30  ;;  %v375_v39 = vrot.slane %v374_v35, 2  ;;  %p1025_p1 = pnand %p1024_p0, %p1018_p11 }
 0x141   :  { %v641_v40 = vadd.f32 %v640_v36, %v639_v32  ;;  %v677_v41 = vrot.slane %v676_v37, 2 }
 0x142   :  { %v340_v42 = vrot.slane %v339_v38, 1  ;;  %v376_v43 = vadd.f32 %v375_v39, %v374_v35 }
 0x143   :  { %v642_v44 = vrot.slane %v641_v40, 1  ;;  %v678_v45 = vadd.f32 %v677_v41, %v676_v37 }
 0x144   :  { %v377_v46 = vrot.slane %v376_v43, 1  ;;  %v341_v48 = vadd.f32 %v340_v42, %v339_v38 }
 0x145   :  { %v679_v47 = vrot.slane %v678_v45, 1  ;;  %v643_v50 = vadd.f32 %v642_v44, %v641_v40 }
 0x146   :  { %v378_v49 = vadd.f32 %v377_v46, %v376_v43 }
 0x147   :  { %v680_v51 = vadd.f32 %v679_v47, %v678_v45 }
 0x148   :  { %v380_v52 = vsel %vm379_vm0, %v341_v48, %v378_v49 }
 0x149   :  { %381 = vst [vmem:[#allocation11] sm:$0x3] %v380_v52  ;;  %v681_v53 = vsel %vm379_vm0, %v643_v50, %v680_v51 }
 0x14a   :  { %1028 = shalt.err (!%p1025_p1)
}
 0x14b   :  { %704 = dma.vmem_to_hbm [thread:$0]  %s702_s26, 32, %s1195_s5, [#allocation12]   ;;  %682 = vst [vmem:[#allocation14] sm:$0x3] %v681_v53 }
 0x14c   :  { %s1037_s11 = scalar_lea.vmem %s711_s28, 2048  ;;  %p1042_p3 = scmp.lt.s32.totalorder %s711_s28, %s711_s28 }
 0x14d   :  { %p1038_p2 = scmp.ne.s32.totalorder %s711_s28, %s1037_s11  ;;  %p1043_p4 = scmp.lt.s32.totalorder %s1037_s11, %s1037_s11 }
 0x14f   :  { %p1044_p5 = por %p1043_p4, %p1042_p3 }
 0x151   :  { %p1045_p6 = pnand %p1044_p5, %p1038_p2 }
 0x153   :  { %1048 = shalt.err (!%p1045_p6)
}
 0x154   :  { %716 = dma.vmem_to_hbm [thread:$0]  %s711_s28, 2048, %s1196_s6, [#allocation12], %s1096_s22, %s1096_s22, %s1097_s23  }
 0x155   :  { %s1057_s14 = scalar_lea.vmem %s724_s30, 32  ;;  %p1062_p8 = scmp.lt.s32.totalorder %s724_s30, %s724_s30 }
 0x156   :  { %p1058_p7 = scmp.ne.s32.totalorder %s724_s30, %s1057_s14  ;;  %p1063_p9 = scmp.lt.s32.totalorder %s1057_s14, %s1057_s14 }
 0x158   :  { %p1064_p10 = por %p1063_p9, %p1062_p8 }
 0x15a   :  { %p1065_p11 = pnand %p1064_p10, %p1058_p7 }
 0x15c   :  { %1068 = shalt.err (!%p1065_p11)
}
 0x15d   :  { %726 = dma.vmem_to_hbm [thread:$0]  %s724_s30, 32, %s1197_s7, [#allocation15]  }
 0x15e   :  { %1083 = dma.done.wait [#allocation4], 2048  }
 0x15f   :  { %1084 = vsyncadd [#allocation4], 4294965248 }
 0x160   :  { %1085 = dma.done.wait [#allocation12], 2080  }
 0x161   :  { %1086 = vsyncadd [#allocation12], 4294965216 }
 0x162   :  { %1087 = dma.done.wait [#allocation15], 32  }
 0x163   :  { %1088 = vsyncadd [#allocation15], 4294967264 }
 0x164   :  { %739 = vsyncpa [#allocation3], 1 }
 0x165   :  { %740 = vsyncpa [#allocation6], 1 }
 0x166   :  { %741 = vsyncpa [#allocation9], 1 }
 0x167   :  { %742 = vsyncpa [#allocation4], 1 }
 0x168   :  { %743 = vsyncpa [#allocation12], 1 }
 0x169   :  { %744 = vsyncpa [#allocation15], 1 }

</bundles_post_ra>
